<compile_context>
chip_gen: v5e
topology: v5e:2x2
jax: 0.10.0
libtpu: 0.0.40
codegen_flags: <defaults>
</compile_context>

<pallas_src>
import jax
import jax.numpy as jnp
from jax.experimental import pallas as pl
from jax.experimental.pallas import tpu as pltpu


def _round_up(x, m):
    return ((x + m - 1) // m) * m


def _grad_mag_kernel(x_ref, o_ref):
    """x_ref / o_ref: (B, Hp, Wp) block of fused (n*c) slices, zero-padded on
    the bottom rows (>= H) and right columns (>= W)."""
    x = x_ref[...]
    _, hp, wp = x.shape

    # Vertical central difference: rolls along the sublane axis (XLU).
    # Wrap-around hits the zero halo rows, i.e. conv2d's zero padding.
    up = pltpu.roll(x, shift=hp - 1, axis=1)
    dn = pltpu.roll(x, shift=1, axis=1)
    v = up - dn

    # Horizontal central difference: rolls along the lane axis (XLU).
    lf = pltpu.roll(x, shift=wp - 1, axis=2)
    rt = pltpu.roll(x, shift=1, axis=2)
    h = lf - rt

    eps = jnp.asarray(1e-6, dtype=x.dtype)
    o_ref[...] = jnp.sqrt(v * v + h * h + eps)  # sqrt lands on the EUP slot


def _pick_leading_block(m, slice_bytes, budget_bytes):
    """Largest divisor of m whose block fits the VMEM budget; prefer >= 2 grid
    steps so the parallel axis can shard across TensorCores (v7x)."""
    candidates = [b for b in range(1, m + 1)
                  if m % b == 0 and b * slice_bytes <= budget_bytes]
    if not candidates:
        # TODO(synk): halo-tile over H for images whose single slice exceeds
        # the per-block VMEM budget.
        return 1
    multi_step = [b for b in candidates if m // b >= 2]
    return max(multi_step) if multi_step else max(candidates)


def gradient_nopadding(x, *, block_bytes_budget=2 << 20, vmem_limit_bytes=48 << 20):
    """x: (N, 3, H, W) float -> (N, 3, H, W) gradient magnitude per channel.

    block_bytes_budget (~2 MiB default) keeps input+output double buffers plus
    in-kernel temporaries well under the scoped VMEM limit on v5e/v6e/v7x; it
    can be raised for large images on chips with more VMEM headroom.
    """
    n, c, h, w = x.shape
    assert c == 3, "gradient_nopadding expects 3 input channels"
    m = n * c

    # Zero-pad: last dim to a multiple of 128 (lane-dense stores), H to a
    # multiple of 8, each with at least one halo row/col of zeros so the roll
    # wrap-around reproduces conv2d(padding=1) zero padding mask-free.
    hp = _round_up(h + 1, 8)
    wp = _round_up(w + 1, 128)
    xp = jnp.pad(x.reshape(m, h, w), ((0, 0), (0, hp - h), (0, wp - w)))

    slice_bytes = hp * wp * xp.dtype.itemsize
    blk = _pick_leading_block(m, slice_bytes, block_bytes_budget)
    grid = (m // blk,)

    spec = pl.BlockSpec((blk, hp, wp), lambda i: (i, 0, 0))
    out = pl.pallas_call(
        _grad_mag_kernel,
        out_shape=jax.ShapeDtypeStruct((m, hp, wp), xp.dtype),
        grid_spec=pltpu.PrefetchScalarGridSpec(
            num_scalar_prefetch=0,
            grid=grid,
            in_specs=[spec],
            out_specs=spec,
        ),
        compiler_params=pltpu.CompilerParams(
            dimension_semantics=("parallel",),
            vmem_limit_bytes=vmem_limit_bytes,
        ),
    )(xp)
    return out[:, :h, :w].reshape(n, c, h, w)


def _reference(x):
    # Pure-JAX reference mirroring F.conv2d(padding=1) with the fixed kernels.
    xp = jnp.pad(x, ((0, 0), (0, 0), (1, 1), (1, 1)))
    v = xp[:, :, 2:, 1:-1] - xp[:, :, :-2, 1:-1]
    h = xp[:, :, 1:-1, 2:] - xp[:, :, 1:-1, :-2]
    return jnp.sqrt(v * v + h * h + 1e-6)


if __name__ == "__main__":
    key = jax.random.PRNGKey(0)
    x = jax.random.normal(key, (2, 3, 16, 16), dtype=jnp.float32)

    out = jax.block_until_ready(gradient_nopadding(x))
    ref = _reference(x)

    assert out.shape == (2, 3, 16, 16)
    assert jnp.allclose(out, ref, atol=1e-5, rtol=1e-5), "mismatch vs reference"
    print("KERNEL_OK")
</pallas_src>

<mosaic_0001>
module attributes {stable_mosaic.version = 11 : i64} {
  func.func @_grad_mag_kernel(%arg0: i32, %arg1: memref<3x24x128xf32, #tpu.memory_space<vmem>>, %arg2: memref<3x24x128xf32, #tpu.memory_space<vmem>>) attributes {dimension_semantics = [#tpu.dimension_semantics<parallel>], iteration_bounds = array<i64: 2>, scalar_prefetch = 0 : i64, scratch_operands = 0 : i64, tpu.core_type = #tpu.core_type<tc>, window_params = [{transform_indices = @transform_0, window_bounds = array<i64: 3, 24, 128>}, {transform_indices = @transform_1, window_bounds = array<i64: 3, 24, 128>}]} {
    %c0 = arith.constant 0 : index
    %c0_0 = arith.constant 0 : index
    %c0_1 = arith.constant 0 : index
    %0 = vector.load %arg1[%c0, %c0_0, %c0_1] : memref<3x24x128xf32, #tpu.memory_space<vmem>>, vector<3x24x128xf32>
    %c23_i32 = arith.constant 23 : i32
    %1 = tpu.dynamic_rotate %0 by %c23_i32 dim 1 : vector<3x24x128xf32>, i32 -> vector<3x24x128xf32>
    %c1_i32 = arith.constant 1 : i32
    %2 = tpu.dynamic_rotate %0 by %c1_i32 dim 1 : vector<3x24x128xf32>, i32 -> vector<3x24x128xf32>
    %3 = arith.subf %1, %2 : vector<3x24x128xf32>
    %c127_i32 = arith.constant 127 : i32
    %4 = tpu.dynamic_rotate %0 by %c127_i32 dim 2 : vector<3x24x128xf32>, i32 -> vector<3x24x128xf32>
    %c1_i32_2 = arith.constant 1 : i32
    %5 = tpu.dynamic_rotate %0 by %c1_i32_2 dim 2 : vector<3x24x128xf32>, i32 -> vector<3x24x128xf32>
    %6 = arith.subf %4, %5 : vector<3x24x128xf32>
    %7 = arith.mulf %3, %3 : vector<3x24x128xf32>
    %8 = arith.mulf %6, %6 : vector<3x24x128xf32>
    %9 = arith.addf %7, %8 : vector<3x24x128xf32>
    %cst = arith.constant 9.99999997E-7 : f32
    %10 = vector.broadcast %cst : f32 to vector<3x24x128xf32>
    %11 = arith.addf %9, %10 : vector<3x24x128xf32>
    %12 = math.sqrt %11 : vector<3x24x128xf32>
    %c0_3 = arith.constant 0 : index
    %c0_4 = arith.constant 0 : index
    %c0_5 = arith.constant 0 : index
    %13 = vector.load %arg2[%c0_3, %c0_4, %c0_5] : memref<3x24x128xf32, #tpu.memory_space<vmem>>, vector<3x24x128xf32>
    tpu.vector_store %arg2[%c0_3, %c0_4, %c0_5], %12 {strides = array<i32>} : memref<3x24x128xf32, #tpu.memory_space<vmem>>, vector<3x24x128xf32>,
    return
  }
  func.func @transform_0(%arg0: i32) -> (i32, i32, i32) {
    %c0_i32 = arith.constant 0 : i32
    %c0_i32_0 = arith.constant 0 : i32
    %c0_i32_1 = arith.constant 0 : i32
    return %arg0, %c0_i32, %c0_i32_0 : i32, i32, i32
  }
  func.func @transform_1(%arg0: i32) -> (i32, i32, i32) {
    %c0_i32 = arith.constant 0 : i32
    %c0_i32_0 = arith.constant 0 : i32
    %c0_i32_1 = arith.constant 0 : i32
    return %arg0, %c0_i32, %c0_i32_0 : i32, i32, i32
  }
}

</mosaic_0001>

<bundles_post_ra>
// kernel: tpu_custom_call.1
= control target key start
LH: loop header
LB: loop body
LE: loop exit
PB: predicated region body
PF: predicated region fallthrough
CT: control target
= control target key end

     0   :  { %6 = vsyncpa [#allocation3], 0  ;;  %s970_s0 = inlined_call_operand.hbm [shape: f32[6,24,128], index: 0, kind: input, shape index: {}]   ;;  %s971_s1 = inlined_call_operand.hbm [shape: f32[6,24,128], index: 1, kind: output, shape index: {}]  }
   0x1   :  { %8 = vsyncpa [#allocation3 + $0x1], 0 }
   0x2   :  { %9 = vsyncpa [#allocation4], 0 }
   0x3   :  { %11 = vsyncpa [#allocation4 + $0x1], 0  ;;  %s684_s6 = smov 0   ;;  %s686_s7 = smov 0  }
   0x4   :  { %s688_s8 = smov 0   ;;  %s690_s9 = smov 0  }
   0x5 LB: > { %s705_s10 = sadd.s32 4294967295, %s666_s9   ;;  %s486_s11 = sadd.s32 4294967294, %s666_s9   ;;  %s666_s9 = sphi %s690_s9, %s979_s9   ;;  %s662_s8 = sphi %s688_s8, %s978_s8   ;;  %s658_s7 = sphi %s686_s7, %s977_s7   ;;  %s654_s6 = sphi %s684_s6, %s976_s6  }
   0x6   : > { %s709_s12 = sadd.s32 1, %s666_s9   ;;  %s24_s13 = sadd.s32 1, %s662_s8 }
   0x7   : > { %s21_s14 = ssub.s32 %s666_s9, %s709_s12  ;;  %p31_p0 = scmp.ne.s32.totalorder %s662_s8, %s658_s7 }
   0x8   : > { %p22_p1 = scmp.eq.s32.totalorder %s21_s14, 0  ;;  %p32_p2 = scmp.eq.s32.totalorder %s666_s9, 0 }
   0x9   : > { %p37_p3 = scmp.ne.s32.totalorder %s658_s7, %s654_s6  ;;  %p38_p4 = scmp.eq.s32.totalorder %s705_s10, 0 }
   0xa   : > { %s721_s15 = scalar_select %p22_p1, %s662_s8, %s24_s13  }
   0xb   : > { %p33_p5 = por %p32_p2, %p31_p0  ;;  %p723_p6 = por %p38_p4, %p37_p3 }
   0xc   : > { %p61_p7 = scmp.eq.s32.totalorder %s705_s10, 1  ;;  %p67_p8 = scmp.eq.s32.totalorder %s486_s11, 1 }
   0xd   : > { %p488_p9 = scmp.ge.s32.totalorder %s666_s9, 2  ;;  %p510_p10 = scmp.lt.s32.totalorder %s666_s9, 2 }
   0xe   : > { %p730_p11 = por %p61_p7, %p31_p0  ;;  %p734_p12 = por %p67_p8, %p37_p3 }
   0xf   : > { %s87_s19 = sand.u32 1, %s662_s8   ;;  %s511_s21 = smul.u32 72, %s666_s9 }
  0x10   : > { %s494_s20 = smul.u32 72, %s87_s19  ;;  %p740_p13 = pnand %p510_p10, %p33_p5 }
  0x11   : > { %s97_s25 = scalar_lea.hbm %s970_s0, %s511_s21  ;;  %p490_p0 = scmp.ge.s32.totalorder %s666_s9, 1 }
  0x12   : > { %s91_s26 = scalar_lea.vmem [#allocation2], %s494_s20  ;;  %s98_s28 = sshll.u32 %s97_s25, 4  ;;  %s99_s28 = int_to_ptr.hbm [resolvable:$true] %s98_s28 }
  0x13   : > { %s100_s27 = sshll.u32 %s91_s26, 4  ;;  %s88_s29 = scalar_lea.sflag [#allocation3], %s87_s19  ;;  %s101_s27 = int_to_ptr.vmem [resolvable:$true] %s100_s27 }
  0x14   : > { %s570_s30 = sshra.s32 %s99_s28, 4  ;;  %p574_p2 = pneg %p740_p13  ;;  %s571_s30 = int_to_ptr.hbm [resolvable:$true] %s570_s30 }
  0x15   : > { %s572_s2 = scalar_lea.hbm %s571_s30, 72  ;;  %s577_s5 = scalar_lea.hbm %s970_s0, 144 }
  0x16   : > { %p573_p1 = scmp.ne.s32.totalorder %s571_s30, %s572_s2  ;;  %p578_p5 = scmp.lt.s32.totalorder %s571_s30, %s970_s0 }
  0x17   : > { %p579_p7 = scmp.lt.s32.totalorder %s577_s5, %s572_s2 }
  0x18   : > { %p575_p3 = pnand %p574_p2, %p573_p1 }
  0x19   : > { %p580_p8 = por %p579_p7, %p578_p5 }
  0x1a   : > { %p576_p4 = pneg %p575_p3 }
  0x1c   : > { %p581_p10 = pnand %p580_p8, %p576_p4 }
  0x1e   : > { %584 = shalt.err (!%p581_p10)
}
  0x1f   : > { %s668_s14 = smov 128   ;;  %s669_s19 = smov 8  }
  0x20   : > { %505 = dma.hbm_to_vmem [thread:$0]  (!%p740_p13), %s99_s28, 1152, %s101_s27, %s88_s29, %s668_s14, %s668_s14, %s669_s19  }
  0x21   : > { %p108_p1 = scmp.lt.s32.totalorder %s666_s9, 3 }
  0x23   : > { %p109_p2 = pnand %p490_p0, %p108_p1 }
  0x24   : > { %s762_s20 = sand.u32 (!%p109_p2), 1, %s658_s7  }
  0x25   : > { %112 = sbr.rel (%p109_p2) target bundleno = 233 (0xe9), region = 24  ;;  %s115_s23 = scalar_lea.sflag (!%p109_p2), [#allocation3], %s762_s20 }
  0x26   : > { %s496_s21 = smul.u32 (!%p109_p2), 72, %s762_s20 }
  0x28   : > { %s118_s24 = scalar_lea.vmem (!%p109_p2), [#allocation2], %s496_s21 }
  0x2a   : > { %645 = dma.done.wait (%p723_p6), %s115_s23, 1152  }
  0x2b   : > { %647 = vsyncadd (%p723_p6), %s115_s23, 4294966144  ;;  %v772_v0 = vld [vmem:[%s118_s24 + $0x20] sm:$0xff]  ;;  %v774_v1 = vld [vmem:[%s118_s24 + $0x10] sm:$0xff]  ;;  %s670_s22 = smov 127   ;;  %s671_s16 = smov 1   ;;  %v158_v9 = vlaneseq }
  0x2c   : > { %v140_v2 = vld [vmem:[%s118_s24] sm:$0xff]  ;;  %206 = vrot.lane.b32.xlu2 %v772_v0, %s670_s22  ;;  %202 = vrot.lane.b32.xlu1 %v774_v1, %s670_s22  ;;  %v778_v3 = vld [vmem:[%s118_s24 + $0x28] sm:$0xff]  ;;  %v155_v10 = vrot.slane %v774_v1, 1  ;;  %v176_v11 = vrot.slane %v774_v1, 7  ;;  %v174_v18 = vrot.slane %v772_v0, 7  ;;  %v153_v43 = vrot.slane %v772_v0, 1 }
  0x2d   : > { %198 = vrot.lane.b32.xlu0 %v140_v2, %s670_s22  ;;  %v780_v4 = vld [vmem:[%s118_s24 + $0x18] sm:$0xff]  ;;  %v141_v5 = vld [vmem:[%s118_s24 + $0x8] sm:$0xff]  ;;  %v784_v6 = vld [vmem:[%s118_s24 + $0x40] sm:$0xff]  ;;  %v149_v12 = vrot.slane %v140_v2, 1  ;;  %v159_v14 = vshrl.u32 %v158_v9, 7  ;;  %v156_v19 = vrot.slane %v778_v3, 1 }
  0x2e   : > { %v786_v7 = vld [vmem:[%s118_s24 + $0x38] sm:$0xff]  ;;  %v788_v8 = vld [vmem:[%s118_s24 + $0x30] sm:$0xff]  ;;  %v173_v13 = vrot.slane %v141_v5, 7  ;;  %v177_v20 = vrot.slane %v778_v3, 7  ;;  %v150_v21 = vrot.slane %v780_v4, 1  ;;  %v157_v26 = vrot.slane %v784_v6, 1 }
  0x2f   : > { %vm160_vm0 = vcmp.lt.s32.totalorder %v159_v14, 7  ;;  %vm179_vm1 = vcmp.lt.s32.totalorder %v159_v14, 1  ;;  %v178_v27 = vrot.slane %v784_v6, 7  ;;  %v175_v28 = vrot.slane %v786_v7, 7  ;;  %s853_s25 = scalar_lea.vmem [#allocation5], %s496_s21  ;;  %s512_s26 = smul.u32 72, %s705_s10 }
  0x30   : > { %v167_v15 = vsel %vm160_vm0, %v155_v10, %v149_v12  ;;  %v180_v16 = vsel %vm179_vm1, %v173_v13, %v176_v11  ;;  %v168_v23 = vsel %vm160_vm0, %v156_v19, %v150_v21  ;;  %v181_v24 = vsel %vm179_vm1, %v174_v18, %v177_v20  ;;  %s410_s29 = sshll.u32 %s853_s25, 4  ;;  %s397_s2 = scalar_lea.sflag [#allocation4], %s762_s20  ;;  %s411_s29 = int_to_ptr.vmem [resolvable:$true] %s410_s29 }
  0x31   : > { %v191_v17 = vsub.f32 %v167_v15, %v180_v16  ;;  %v194_v25 = vsub.f32 %v168_v23, %v181_v24  ;;  %v151_v29 = vrot.slane %v788_v8, 1  ;;  %v182_v32 = vsel %vm179_vm1, %v175_v28, %v178_v27  ;;  %s409_s28 = scalar_lea.hbm %s971_s1, %s512_s26  ;;  %s620_s13 = scalar_lea.hbm %s971_s1, 144 }
  0x32   : > { %v170_v34 = vrot.slane %v140_v2, 7  ;;  %v152_v35 = vrot.slane %v141_v5, 1  ;;  %v171_v44 = vrot.slane %v780_v4, 7  ;;  %v162_v51 = vsel %vm160_vm0, %v153_v43, %v156_v19  ;;  %s412_s30 = sshll.u32 %s409_s28, 4  ;;  %s413_s30 = int_to_ptr.hbm [resolvable:$true] %s412_s30 }
  0x33   : > { %v169_v31 = vsel %vm160_vm0, %v157_v26, %v151_v29  ;;  %v245_v48 = vmul.f32 %v191_v17, %v191_v17  ;;  %v165_v53 = vsel %vm160_vm0, %v150_v21, %v153_v43  ;;  %v154_v61 = vrot.slane %v786_v7, 1  ;;  %s614_s3 = sshra.s32 %s413_s30, 4  ;;  %s615_s3 = int_to_ptr.hbm [resolvable:$true] %s614_s3 }
  0x34   : > { %208 = vrot.lane.b32.xlu2 %v778_v3, %s670_s22  ;;  %204 = vrot.lane.b32.xlu1 %v780_v4, %s670_s22  ;;  %v197_v33 = vsub.f32 %v169_v31, %v182_v32  ;;  %v161_v37 = vsel %vm160_vm0, %v152_v35, %v155_v10  ;;  %v183_v38 = vsel %vm179_vm1, %v170_v34, %v173_v13  ;;  %v172_v62 = vrot.slane %v788_v8, 7  ;;  %s616_s4 = scalar_lea.hbm %s615_s3, 72  ;;  %p621_p3 = scmp.lt.s32.totalorder %s615_s3, %s971_s1 }
  0x35   : > { %200 = vrot.lane.b32.xlu0 %v141_v5, %s670_s22  ;;  %v164_v39 = vsel %vm160_vm0, %v149_v12, %v152_v35  ;;  %v186_v40 = vsel %vm179_vm1, %v176_v11, %v170_v34  ;;  %v190_v41 = vsub.f32 %v161_v37, %v183_v38  ;;  %v184_v52 = vsel %vm179_vm1, %v171_v44, %v174_v18  ;;  %p617_p6 = scmp.ne.s32.totalorder %s615_s3, %s616_s4  ;;  %p622_p4 = scmp.lt.s32.totalorder %s620_s13, %s616_s4 }
  0x36   : > { %v189_v42 = vsub.f32 %v164_v39, %v186_v40  ;;  %v827_v54 = vsub.f32 %v162_v51, %v184_v52  ;;  %v187_v55 = vsel %vm179_vm1, %v177_v20, %v171_v44  ;;  %v251_v16 = vmul.f32 %v197_v33, %v197_v33 }
  0x37   : > { %v830_v57 = vsub.f32 %v165_v53, %v187_v55  ;;  %p618_p13 = pnand %p617_p6, %p730_p11  ;;  %p623_p5 = por %p622_p4, %p621_p3 }
  0x38   : > { %v243_v34 = vmul.f32 %v189_v42, %v189_v42  ;;  %v247_v55 = vmul.f32 %v827_v54, %v827_v54 }
  0x39   : > { %p619_p0 = pneg %p618_p13 }
  0x3b   : > { %p624_p7 = pnand %p623_p5, %p619_p0 }
  0x3c   : > { %214 = vrot.lane.b32.xlu2 %v784_v6, %s670_s22  ;;  %212 = vrot.lane.b32.xlu1 %v786_v7, %s670_s22 }
  0x3d   : > { %210 = vrot.lane.b32.xlu0 %v788_v8, %s670_s22 }
  0x44   : > { %220 = vrot.lane.b32.xlu2 %v774_v1, %s671_s16  ;;  %218 = vrot.lane.b32.xlu1 %v141_v5, %s671_s16  ;;  %v166_v5 = vsel %vm160_vm0, %v151_v29, %v154_v61  ;;  %v244_v29 = vmul.f32 %v190_v41, %v190_v41 }
  0x45   : > { %216 = vrot.lane.b32.xlu0 %v140_v2, %s671_s16 }
  0x4c   : > { %226 = vrot.lane.b32.xlu2 %v778_v3, %s671_s16  ;;  %224 = vrot.lane.b32.xlu1 %v772_v0, %s671_s16  ;;  %v248_v0 = vmul.f32 %v194_v25, %v194_v25  ;;  %v163_v3 = vsel %vm160_vm0, %v154_v61, %v157_v26 }
  0x4d   : > { %222 = vrot.lane.b32.xlu0 %v780_v4, %s671_s16  ;;  %v185_v4 = vsel %vm179_vm1, %v172_v62, %v175_v28 }
  0x4e   : > { %v840_v10 = vsub.f32 %v163_v3, %v185_v4 }
  0x54   : > { %232 = vrot.lane.b32.xlu2 %v784_v6, %s671_s16  ;;  %230 = vrot.lane.b32.xlu1 %v786_v7, %s671_s16  ;;  %v188_v6 = vsel %vm179_vm1, %v178_v27, %v172_v62 }
  0x55   : > { %228 = vrot.lane.b32.xlu0 %v788_v8, %s671_s16  ;;  %v842_v11 = vsub.f32 %v166_v5, %v188_v6 }
  0x86   : > { %v808_v22 = vpop.permute.xlu2 %206 }
  0x8e   : > { %v209_v30 = vpop.permute.xlu2 %208 }
  0x96   : > { %v215_v36 = vpop.permute.xlu2 %214 }
  0x9e   : > { %v221_v45 = vpop.permute.xlu2 %220  ;;  %v203_v46 = vpop.permute.xlu1 %202 }
  0x9f   : > { %v236_v47 = vsub.f32 %v203_v46, %v221_v45  ;;  %v199_v49 = vpop.permute.xlu0 %198 }
  0xa1   : > { %v254_v50 = vmul.f32 %v236_v47, %v236_v47 }
  0xa3   : > { %v263_v56 = vadd.f32 %v254_v50, %v245_v48 }
  0xa5   : > { %v272_v58 = vadd.f32 1e-06, %v263_v56 }
  0xa6   : > { %v227_v59 = vpop.permute.xlu2 %226  ;;  %v832_v60 = vpop.permute.xlu1 %204 }
  0xa7   : > { %552 = vrsqrt.f32 %v272_v58  ;;  %v201_v63 = vpop.permute.xlu0 %200  ;;  %v239_v1 = vsub.f32 %v209_v30, %v227_v59  ;;  %vm310_vm2 = vcmp.eq.f32.partialorder %v272_v58, inf  ;;  %v313_v35 = vand.u32 2147483648, %v272_v58 }
  0xa8   : > { %vm312_vm3 = vcmp.eq.f32.partialorder %v272_v58, 0.0 }
  0xa9   : > { %v257_v2 = vmul.f32 %v239_v1, %v239_v1 }
  0xab   : > { %v266_v9 = vadd.f32 %v257_v2, %v248_v0 }
  0xad   : > { %v553_v7 = vpop.eup %552  ;;  %v275_v12 = vadd.f32 1e-06, %v266_v9 }
  0xae   : > { %v304_v8 = vmul.f32 %v553_v7, %v272_v58  ;;  %v233_v13 = vpop.permute.xlu2 %232  ;;  %v844_v15 = vpop.permute.xlu1 %212 }
  0xaf   : > { %v242_v17 = vsub.f32 %v215_v36, %v233_v13  ;;  %v846_v18 = vpop.permute.xlu0 %210  ;;  %554 = vrsqrt.f32 %v275_v12  ;;  %vm346_vm4 = vcmp.eq.f32.partialorder %v275_v12, inf  ;;  %vm348_vm5 = vcmp.eq.f32.partialorder %v275_v12, 0.0 }
  0xb0   : > { %v305_v19 = vmul.f32 %v553_v7, %v304_v8 }
  0xb1   : > { %v260_v20 = vmul.f32 %v242_v17, %v242_v17 }
  0xb2   : > { %v306_v14 = vmul.f32 0.5, %v305_v19 }
  0xb3   : > { %v269_v21 = vadd.f32 %v260_v20, %v251_v16 }
  0xb4   : > { %v307_v23 = vsub.f32 1.5, %v306_v14 }
  0xb5   : > { %v848_v24 = vadd.f32 1e-06, %v269_v21  ;;  %v555_v25 = vpop.eup %554 }
  0xb6   : > { %v308_v26 = vmul.f32 %v553_v7, %v307_v23  ;;  %v219_v27 = vpop.permute.xlu1 %218  ;;  %v340_v28 = vmul.f32 %v555_v25, %v275_v12 }
  0xb7   : > { %556 = vrsqrt.f32 %v848_v24  ;;  %v217_v30 = vpop.permute.xlu0 %216  ;;  %v235_v32 = vsub.f32 %v201_v63, %v219_v27  ;;  %vm382_vm6 = vcmp.eq.f32.partialorder %v848_v24, inf  ;;  %vm384_vm7 = vcmp.eq.f32.partialorder %v848_v24, 0.0 }
  0xb8   : > { %v309_v31 = vmul.f32 %v308_v26, %v272_v58  ;;  %v234_v33 = vsub.f32 %v199_v49, %v217_v30  ;;  %v341_v36 = vmul.f32 %v555_v25, %v340_v28  ;;  %v385_v17 = vand.u32 2147483648, %v848_v24 }
  0xb9   : > { %v253_v38 = vmul.f32 %v235_v32, %v235_v32  ;;  %v249_v26 = vmul.f32 %v842_v11, %v842_v11 }
  0xba   : > { %v311_v37 = vsel %vm310_vm2, %v272_v58, %v309_v31  ;;  %v252_v39 = vmul.f32 %v234_v33, %v234_v33  ;;  %v342_v43 = vmul.f32 0.5, %v341_v36  ;;  %v349_v58 = vand.u32 2147483648, %v275_v12 }
  0xbb   : > { %v314_v40 = vsel %vm312_vm3, %v313_v35, %v311_v37  ;;  %v262_v41 = vadd.f32 %v253_v38, %v244_v29 }
  0xbc   : > { %389 = vst [vmem:[%s853_s25 + $0x10] sm:$0xff] %v314_v40  ;;  %v261_v44 = vadd.f32 %v252_v39, %v243_v34  ;;  %v343_v46 = vsub.f32 1.5, %v342_v43 }
  0xbd   : > { %v557_v45 = vpop.eup %556  ;;  %v857_v47 = vadd.f32 1e-06, %v262_v41 }
  0xbe   : > { %v376_v42 = vmul.f32 %v557_v45, %v848_v24  ;;  %v859_v48 = vadd.f32 1e-06, %v261_v44  ;;  %v225_v49 = vpop.permute.xlu1 %224  ;;  %v344_v50 = vmul.f32 %v555_v25, %v343_v46 }
  0xbf   : > { %v238_v51 = vsub.f32 %v808_v22, %v225_v49  ;;  %v223_v52 = vpop.permute.xlu0 %222  ;;  %558 = vrsqrt.f32 %v857_v47  ;;  %v246_v22 = vmul.f32 %v830_v57, %v830_v57  ;;  %vm298_vm8 = vcmp.eq.f32.partialorder %v857_v47, inf }
  0xc0   : > { %v377_v53 = vmul.f32 %v557_v45, %v376_v42  ;;  %v345_v56 = vmul.f32 %v344_v50, %v275_v12  ;;  %560 = vrsqrt.f32 %v859_v48  ;;  %v237_v63 = vsub.f32 %v832_v60, %v223_v52 }
  0xc1   : > { %v256_v61 = vmul.f32 %v238_v51, %v238_v51  ;;  %vm300_vm9 = vcmp.eq.f32.partialorder %v857_v47, 0.0  ;;  %v301_v39 = vand.u32 2147483648, %v857_v47  ;;  %vm286_vm10 = vcmp.eq.f32.partialorder %v859_v48, inf }
  0xc2   : > { %v378_v59 = vmul.f32 0.5, %v377_v53  ;;  %v347_v62 = vsel %vm346_vm4, %v275_v12, %v345_v56  ;;  %v255_v3 = vmul.f32 %v237_v63, %v237_v63  ;;  %v250_v12 = vmul.f32 %v840_v10, %v840_v10 }
  0xc3   : > { %v350_v0 = vsel %vm348_vm5, %v349_v58, %v347_v62  ;;  %v265_v2 = vadd.f32 %v256_v61, %v247_v55  ;;  %v289_v44 = vand.u32 2147483648, %v859_v48  ;;  %vm288_vm11 = vcmp.eq.f32.partialorder %v859_v48, 0.0 }
  0xc4   : > { %v379_v1 = vsub.f32 1.5, %v378_v59  ;;  %392 = vst [vmem:[%s853_s25 + $0x28] sm:$0xff] %v350_v0  ;;  %v264_v8 = vadd.f32 %v255_v3, %v246_v22 }
  0xc5   : > { %v559_v54 = vpop.eup %558  ;;  %v870_v5 = vadd.f32 1e-06, %v265_v2 }
  0xc6   : > { %v380_v4 = vmul.f32 %v557_v45, %v379_v1  ;;  %v231_v6 = vpop.permute.xlu1 %230  ;;  %v561_v9 = vpop.eup %560  ;;  %v292_v7 = vmul.f32 %v559_v54, %v857_v47  ;;  %v882_v20 = vadd.f32 1e-06, %v264_v8 }
  0xc7   : > { %v241_v57 = vsub.f32 %v844_v15, %v231_v6  ;;  %v229_v60 = vpop.permute.xlu0 %228  ;;  %v280_v16 = vmul.f32 %v561_v9, %v859_v48  ;;  %562 = vrsqrt.f32 %v870_v5  ;;  %vm334_vm12 = vcmp.eq.f32.partialorder %v870_v5, inf }
  0xc8   : > { %v381_v13 = vmul.f32 %v380_v4, %v848_v24  ;;  %v293_v19 = vmul.f32 %v559_v54, %v292_v7  ;;  %v240_v21 = vsub.f32 %v846_v18, %v229_v60  ;;  %564 = vrsqrt.f32 %v882_v20 }
  0xc9   : > { %v281_v15 = vmul.f32 %v561_v9, %v280_v16  ;;  %v259_v14 = vmul.f32 %v241_v57, %v241_v57  ;;  %vm336_vm13 = vcmp.eq.f32.partialorder %v870_v5, 0.0  ;;  %vm322_vm14 = vcmp.eq.f32.partialorder %v882_v20, inf }
  0xca   : > { %v383_v10 = vsel %vm382_vm6, %v848_v24, %v381_v13  ;;  %v294_v25 = vmul.f32 0.5, %v293_v19  ;;  %v258_v30 = vmul.f32 %v240_v21, %v240_v21  ;;  %vm324_vm15 = vcmp.eq.f32.partialorder %v882_v20, 0.0 }
  0xcb   : > { %v386_v23 = vsel %vm384_vm7, %v385_v17, %v383_v10  ;;  %v282_v27 = vmul.f32 0.5, %v281_v15  ;;  %v268_v28 = vadd.f32 %v259_v14, %v250_v12 }
  0xcc   : > { %395 = vst [vmem:[%s853_s25 + $0x40] sm:$0xff] %v386_v23  ;;  %v295_v29 = vsub.f32 1.5, %v294_v25  ;;  %v267_v18 = vadd.f32 %v258_v30, %v249_v26 }
  0xcd   : > { %v563_v31 = vpop.eup %562  ;;  %v283_v32 = vsub.f32 1.5, %v282_v27  ;;  %v890_v33 = vadd.f32 1e-06, %v268_v28 }
  0xce   : > { %v296_v24 = vmul.f32 %v559_v54, %v295_v29  ;;  %v328_v34 = vmul.f32 %v563_v31, %v870_v5  ;;  %v565_v36 = vpop.eup %564  ;;  %v897_v38 = vadd.f32 1e-06, %v267_v18  ;;  %v325_v54 = vand.u32 2147483648, %v882_v20 }
  0xcf   : > { %v284_v35 = vmul.f32 %v561_v9, %v283_v32  ;;  %566 = vrsqrt.f32 %v890_v33  ;;  %v316_v43 = vmul.f32 %v565_v36, %v882_v20  ;;  %vm370_vm0 = vcmp.eq.f32.partialorder %v890_v33, inf }
  0xd0   : > { %v297_v11 = vmul.f32 %v296_v24, %v857_v47  ;;  %v329_v37 = vmul.f32 %v563_v31, %v328_v34  ;;  %568 = vrsqrt.f32 %v897_v38  ;;  %v373_v57 = vand.u32 2147483648, %v890_v33 }
  0xd1   : > { %v285_v40 = vmul.f32 %v284_v35, %v859_v48  ;;  %v317_v49 = vmul.f32 %v565_v36, %v316_v43  ;;  %vm372_vm1 = vcmp.eq.f32.partialorder %v890_v33, 0.0  ;;  %vm358_vm2 = vcmp.eq.f32.partialorder %v897_v38, inf }
  0xd2   : > { %v299_v41 = vsel %vm298_vm8, %v857_v47, %v297_v11  ;;  %v330_v45 = vmul.f32 0.5, %v329_v37  ;;  %v361_v19 = vand.u32 2147483648, %v897_v38  ;;  %vm360_vm3 = vcmp.eq.f32.partialorder %v897_v38, 0.0 }
  0xd3   : > { %v302_v46 = vsel %vm300_vm9, %v301_v39, %v299_v41  ;;  %v287_v42 = vsel %vm286_vm10, %v859_v48, %v285_v40  ;;  %v318_v53 = vmul.f32 0.5, %v317_v49  ;;  %v337_v48 = vand.u32 2147483648, %v870_v5 }
  0xd4   : > { %388 = vst [vmem:[%s853_s25 + $0x8] sm:$0xff] %v302_v46  ;;  %v290_v50 = vsel %vm288_vm11, %v289_v44, %v287_v42  ;;  %v331_v51 = vsub.f32 1.5, %v330_v45 }
  0xd5   : > { %v567_v52 = vpop.eup %566  ;;  %387 = vst [vmem:[%s853_s25] sm:$0xff] %v290_v50  ;;  %v319_v56 = vsub.f32 1.5, %v318_v53 }
  0xd6   : > { %v332_v55 = vmul.f32 %v563_v31, %v331_v51  ;;  %v364_v47 = vmul.f32 %v567_v52, %v890_v33  ;;  %v569_v58 = vpop.eup %568 }
  0xd7   : > { %v320_v62 = vmul.f32 %v565_v36, %v319_v56  ;;  %v352_v22 = vmul.f32 %v569_v58, %v897_v38 }
  0xd8   : > { %v333_v59 = vmul.f32 %v332_v55, %v870_v5  ;;  %v365_v61 = vmul.f32 %v567_v52, %v364_v47 }
  0xd9   : > { %v321_v2 = vmul.f32 %v320_v62, %v882_v20  ;;  %v353_v3 = vmul.f32 %v569_v58, %v352_v22 }
  0xda   : > { %v335_v63 = vsel %vm334_vm12, %v870_v5, %v333_v59  ;;  %v366_v0 = vmul.f32 0.5, %v365_v61 }
  0xdb   : > { %v338_v1 = vsel %vm336_vm13, %v337_v48, %v335_v63  ;;  %v323_v6 = vsel %vm322_vm14, %v882_v20, %v321_v2  ;;  %v354_v9 = vmul.f32 0.5, %v353_v3 }
  0xdc   : > { %391 = vst [vmem:[%s853_s25 + $0x20] sm:$0xff] %v338_v1  ;;  %v367_v4 = vsub.f32 1.5, %v366_v0  ;;  %v326_v5 = vsel %vm324_vm15, %v325_v54, %v323_v6 }
  0xdd   : > { %390 = vst [vmem:[%s853_s25 + $0x18] sm:$0xff] %v326_v5  ;;  %v355_v8 = vsub.f32 1.5, %v354_v9 }
  0xde   : > { %v368_v7 = vmul.f32 %v567_v52, %v367_v4 }
  0xdf   : > { %v356_v60 = vmul.f32 %v569_v58, %v355_v8 }
  0xe0   : > { %v369_v12 = vmul.f32 %v368_v7, %v890_v33 }
  0xe1   : > { %v357_v17 = vmul.f32 %v356_v60, %v897_v38 }
  0xe2   : > { %v371_v13 = vsel %vm370_vm0, %v890_v33, %v369_v12 }
  0xe3   : > { %v374_v16 = vsel %vm372_vm1, %v373_v57, %v371_v13  ;;  %v359_v20 = vsel %vm358_vm2, %v897_v38, %v357_v17 }
  0xe4   : > { %394 = vst [vmem:[%s853_s25 + $0x38] sm:$0xff] %v374_v16  ;;  %v362_v10 = vsel %vm360_vm3, %v361_v19, %v359_v20 }
  0xe5   : > { %393 = vst [vmem:[%s853_s25 + $0x30] sm:$0xff] %v362_v10 }
  0xe6   : > { %627 = shalt.err (!%p624_p7)
}
  0xe7   : > { %s672_s20 = smov 128   ;;  %s673_s21 = smov 8  }
  0xe8   : > { %500 = dma.vmem_to_hbm [thread:$0]  (%p730_p11), %s411_s29, 1152, %s413_s30, %s397_s2, %s672_s20, %s672_s20, %s673_s21  }
  0xe9 PF: > { %s427_s23 = sand.u32 1, %s654_s6   ;;  %p507_p8 = pnand %p488_p9, %p734_p12 }
  0xea   : > { %s428_s24 = scalar_lea.sflag [#allocation4], %s427_s23 }
  0xeb   : > { %p508_p10 = pneg %p507_p8 }
  0xed   : > { %649 = dma.done.wait (%p508_p10), %s428_s24, 1152  }
  0xee   : > { %651 = vsyncadd (%p508_p10), %s428_s24, 4294966144  ;;  %p14_p1 = scmp.ge.s32.totalorder %s709_s12, 4   ;;  %s976_s6 = smov %s658_s7 }
  0xef   : > { %s977_s7 = smov %s662_s8  ;;  %s978_s8 = smov %s721_s15 }
  0xf0   : > { %s979_s9 = smov %s709_s12  ;;  %16 = sbr.rel (!%p14_p1) target bundleno = 5 (0x5), region = 69 }
  0xf5   :  { %434 = vsyncpa [#allocation3], 1 }
  0xf6   :  { %436 = vsyncpa [#allocation3 + $0x1], 1 }
  0xf7   :  { %437 = vsyncpa [#allocation4], 1 }
  0xf8   :  { %439 = vsyncpa [#allocation4 + $0x1], 1 }

</bundles_post_ra>
